<compile_context>
chip_gen: v7x
topology: tpu7x:2x2x1
jax: 0.10.0
libtpu: 0.0.40
codegen_flags: <defaults>
</compile_context>

<pallas_src>
import functools

import jax
import jax.numpy as jnp
from jax.experimental import pallas as pl
from jax.experimental.pallas import tpu as pltpu


def _cos_sim_kernel(x_ref, y_ref, xn_ref, yn_ref, o_ref, *, inv_temp, eps):
    # (tm, H) . (tn, H) contracted over H -> (tm, tn) on the MXU, f32 accumulate.
    dots = jax.lax.dot_general(
        x_ref[...], y_ref[...],
        dimension_numbers=(((1,), (1,)), ((), ())),
        preferred_element_type=jnp.float32)

    # torch CosineSimilarity: x.y / max(||x||*||y||, eps); then scale by 1/temp.
    denom = jnp.maximum(xn_ref[...] * yn_ref[...], eps)       # (tm,1)*(1,tn)->(tm,tn)
    scale = pl.reciprocal(denom, approx=True) * inv_temp      # EUP, no divides
    o_ref[...] = (dots * scale).astype(o_ref.dtype)


def _round_up(v, m):
    return (v + m - 1) // m * m


def similarity(x, y, temp, eps=1e-8):
    """Pallas equivalent of Similarity(temp)(x, y) for SimCSE-shaped inputs.

    x: (B, 1, H), y: (1, B, H)  ->  (B, B) float32
    """
    assert x.ndim == 3 and y.ndim == 3 and x.shape[1] == 1 and y.shape[0] == 1
    assert x.shape[-1] == y.shape[-1]
    x2d = x[:, 0, :]                      # (B, H), kept in native dtype for MXU
    y2d = y[0, :, :]                      # (B, H)
    B, H = x2d.shape

    # MXU/lane-aligned tiles; single tile per axis when B is small.
    tm = 256 if B > 256 else _round_up(B, 8)
    tn = 256 if B > 256 else _round_up(B, 128)
    bm = _round_up(B, tm)
    bn = _round_up(B, tn)

    # Row norms computed once, wrapper-side (avoids O(grid) redundant reductions).
    xn = jnp.sqrt(jnp.sum(jnp.square(x2d.astype(jnp.float32)),
                          axis=-1, keepdims=True))            # (B, 1)
    yn = jnp.sqrt(jnp.sum(jnp.square(y2d.astype(jnp.float32)),
                          axis=-1))[None, :]                  # (1, B)

    # Zero-pad to tile multiples; padded rows give dots=0, denom=eps -> out 0,
    # and the padded region is sliced away below.
    xp = jnp.pad(x2d, ((0, bm - B), (0, 0)))
    yp = jnp.pad(y2d, ((0, bn - B), (0, 0)))
    xn_p = jnp.pad(xn, ((0, bm - B), (0, 0)))
    yn_p = jnp.pad(yn, ((0, 0), (0, bn - B)))

    kernel = functools.partial(_cos_sim_kernel, inv_temp=1.0 / temp, eps=eps)
    out = pl.pallas_call(
        kernel,
        out_shape=jax.ShapeDtypeStruct((bm, bn), jnp.float32),
        grid=(bm // tm, bn // tn),
        in_specs=[
            pl.BlockSpec((tm, H), lambda i, j: (i, 0)),   # x rows for tile i
            pl.BlockSpec((tn, H), lambda i, j: (j, 0)),   # y rows for tile j
            pl.BlockSpec((tm, 1), lambda i, j: (i, 0)),   # ||x|| per row
            pl.BlockSpec((1, tn), lambda i, j: (0, j)),   # ||y|| per column
        ],
        out_specs=pl.BlockSpec((tm, tn), lambda i, j: (i, j)),
        compiler_params=pltpu.CompilerParams(
            dimension_semantics=("parallel", "parallel")),
    )(xp, yp, xn_p, yn_p)
    return out[:B, :B]


def _reference(x, y, temp, eps=1e-8):
    # Pure-JAX reference of torch CosineSimilarity(dim=-1)(x, y) / temp.
    dots = jnp.sum(x * y, axis=-1)
    nx = jnp.linalg.norm(x, axis=-1)
    ny = jnp.linalg.norm(y, axis=-1)
    return dots / jnp.maximum(nx * ny, eps) / temp


if __name__ == "__main__":
    temp = 0.05  # SimCSE default temperature
    B, H = 256, 64  # exercises the 2x2 tiled grid while staying small

    key = jax.random.PRNGKey(0)
    kx, ky = jax.random.split(key)
    # SimCSE call pattern: z1.unsqueeze(1) vs z2.unsqueeze(0)
    x = jax.random.normal(kx, (B, 1, H), dtype=jnp.float32)
    y = jax.random.normal(ky, (1, B, H), dtype=jnp.float32)

    out = jax.block_until_ready(similarity(x, y, temp))
    ref = _reference(x, y, temp)

    assert out.shape == (B, B)
    # approx reciprocal (EUP) slightly loosens agreement vs the f32 reference.
    assert jnp.allclose(out, ref, atol=1e-2, rtol=1e-2), (
        f"max abs err {jnp.max(jnp.abs(out - ref))}")
    print("KERNEL_OK")
</pallas_src>

<mosaic_0001>
module attributes {stable_mosaic.version = 11 : i64} {
  func.func @_cos_sim_kernel(%arg0: i32, %arg1: i32, %arg2: memref<256x64xf32, #tpu.memory_space<vmem>>, %arg3: memref<256x64xf32, #tpu.memory_space<vmem>>, %arg4: memref<256x1xf32, #tpu.memory_space<vmem>>, %arg5: memref<1x256xf32, #tpu.memory_space<vmem>>, %arg6: memref<256x256xf32, #tpu.memory_space<vmem>>) attributes {dimension_semantics = [#tpu.dimension_semantics<parallel>, #tpu.dimension_semantics<parallel>], iteration_bounds = array<i64: 1, 1>, scalar_prefetch = 0 : i64, scratch_operands = 0 : i64, tpu.core_type = #tpu.core_type<tc>, window_params = [{transform_indices = @transform_0, window_bounds = array<i64: 256, 64>}, {transform_indices = @transform_1, window_bounds = array<i64: 256, 64>}, {transform_indices = @transform_2, window_bounds = array<i64: 256, 1>}, {transform_indices = @transform_3, window_bounds = array<i64: 1, 256>}, {transform_indices = @transform_4, window_bounds = array<i64: 256, 256>}]} {
    %c0 = arith.constant 0 : index
    %c0_0 = arith.constant 0 : index
    %0 = vector.load %arg2[%c0, %c0_0] : memref<256x64xf32, #tpu.memory_space<vmem>>, vector<256x64xf32>
    %c0_1 = arith.constant 0 : index
    %c0_2 = arith.constant 0 : index
    %1 = vector.load %arg3[%c0_1, %c0_2] : memref<256x64xf32, #tpu.memory_space<vmem>>, vector<256x64xf32>
    %cst = arith.constant dense<0.000000e+00> : vector<256x256xf32>
    %2 = tpu.matmul %0, %1, %cst {dimension_numbers = #tpu.dot_dimension_numbers<[1], [1], [0], [0], [0, 0, 1, 0], [], []>} : vector<256x64xf32>, vector<256x64xf32>, vector<256x256xf32> -> vector<256x256xf32>
    %c0_3 = arith.constant 0 : index
    %c0_4 = arith.constant 0 : index
    %3 = vector.load %arg4[%c0_3, %c0_4] : memref<256x1xf32, #tpu.memory_space<vmem>>, vector<256x1xf32>
    %c0_5 = arith.constant 0 : index
    %c0_6 = arith.constant 0 : index
    %4 = vector.load %arg5[%c0_5, %c0_6] : memref<1x256xf32, #tpu.memory_space<vmem>>, vector<1x256xf32>
    %5 = vector.broadcast %3 : vector<256x1xf32> to vector<256x256xf32>
    %6 = vector.broadcast %4 : vector<1x256xf32> to vector<256x256xf32>
    %7 = arith.mulf %5, %6 : vector<256x256xf32>
    %cst_7 = arith.constant 9.99999993E-9 : f32
    %8 = vector.broadcast %cst_7 : f32 to vector<256x256xf32>
    %9 = arith.maximumf %7, %8 : vector<256x256xf32>
    %10 = tpu.reciprocal %9 {approx = true} : vector<256x256xf32> -> vector<256x256xf32>
    %cst_8 = arith.constant 2.000000e+01 : f32
    %11 = vector.broadcast %cst_8 : f32 to vector<256x256xf32>
    %12 = arith.mulf %10, %11 : vector<256x256xf32>
    %13 = arith.mulf %2, %12 : vector<256x256xf32>
    %c0_9 = arith.constant 0 : index
    %c0_10 = arith.constant 0 : index
    %14 = vector.load %arg6[%c0_9, %c0_10] : memref<256x256xf32, #tpu.memory_space<vmem>>, vector<256x256xf32>
    tpu.vector_store %arg6[%c0_9, %c0_10], %13 {strides = array<i32>} : memref<256x256xf32, #tpu.memory_space<vmem>>, vector<256x256xf32>,
    return
  }
  func.func @transform_0(%arg0: i32, %arg1: i32) -> (i32, i32) {
    %c0_i32 = arith.constant 0 : i32
    %c0_i32_0 = arith.constant 0 : i32
    return %arg0, %c0_i32 : i32, i32
  }
  func.func @transform_1(%arg0: i32, %arg1: i32) -> (i32, i32) {
    %c0_i32 = arith.constant 0 : i32
    %c0_i32_0 = arith.constant 0 : i32
    return %arg1, %c0_i32 : i32, i32
  }
  func.func @transform_2(%arg0: i32, %arg1: i32) -> (i32, i32) {
    %c0_i32 = arith.constant 0 : i32
    %c0_i32_0 = arith.constant 0 : i32
    return %arg0, %c0_i32 : i32, i32
  }
  func.func @transform_3(%arg0: i32, %arg1: i32) -> (i32, i32) {
    %c0_i32 = arith.constant 0 : i32
    %c0_i32_0 = arith.constant 0 : i32
    return %c0_i32, %arg1 : i32, i32
  }
  func.func @transform_4(%arg0: i32, %arg1: i32) -> (i32, i32) {
    %c0_i32 = arith.constant 0 : i32
    return %arg0, %arg1 : i32, i32
  }
}

</mosaic_0001>

<bundles_post_ra>
// kernel: tpu_custom_call.1
= control target key start
LH: loop header
LB: loop body
LE: loop exit
PB: predicated region body
PF: predicated region fallthrough
CT: control target
= control target key end

     0   :  { %vm82_vm0 = vcmask 523264   ;;  %v1518_v7 = vmov 0   ;;  %s2217_s0 = inlined_call_operand.vmem [shape: f32[256,64], index: 0, kind: input, shape index: {}]   ;;  %s2218_s1 = inlined_call_operand.vmem [shape: f32[256,64], index: 1, kind: input, shape index: {}]   ;;  %s2219_s2 = inlined_call_operand.vmem [shape: f32[256,1], index: 2, kind: input, shape index: {}]   ;;  %s2220_s3 = inlined_call_operand.vmem [shape: f32[1,256], index: 3, kind: input, shape index: {}]   ;;  %s2221_s4 = inlined_call_operand.hbm [shape: f32[256,256], index: 4, kind: output, shape index: {}]  }
   0x1   :  { %v66_v0 = vld [vmem:[%s2218_s1 + $0x80] sm:$0xff]  ;;  %v67_v1 = vld [vmem:[%s2218_s1 + $0x88] sm:$0xff]  ;;  %vm1558_vm1 = vmpackc.low %vm82_vm0, %vm82_vm0  ;;  %1365 = vset.pattern.permute.xlu1 %v1518_v7  ;;  %1364 = vset.pattern.permute.xlu0 %v1518_v7 }
   0x2   :  { %v50_v2 = vld [vmem:[%s2218_s1] sm:$0xff]  ;;  %v1296_v3 = vpack.c.bf16 %v67_v1, %v66_v0  ;;  %v51_v5 = vld [vmem:[%s2218_s1 + $0x8] sm:$0xff]  ;;  %v68_v6 = vld [vmem:[%s2218_s1 + $0x90] sm:$0xff] }
   0x3   :  { %v1299_v8 = vpack.c.bf16 %v51_v5, %v50_v2  ;;  %v69_v9 = vld [vmem:[%s2218_s1 + $0x98] sm:$0xff]  ;;  %v52_v11 = vld [vmem:[%s2218_s1 + $0x10] sm:$0xff]  ;;  %v70_v13 = vld [vmem:[%s2218_s1 + $0xa0] sm:$0xff] }
   0x4   :  { %1298 = vmatprep.subr.msk.bf16.mxu0 %vm1558_vm1, %v1296_v3  ;;  %1344 = vmatprep.subr.msk.bf16.mxu1 %vm1558_vm1, %v1296_v3  ;;  %v1302_v10 = vpack.c.bf16 %v69_v9, %v68_v6  ;;  %v53_v12 = vld [vmem:[%s2218_s1 + $0x18] sm:$0xff]  ;;  %v71_v14 = vld [vmem:[%s2218_s1 + $0xa8] sm:$0xff]  ;;  %v1598_v17 = vld [vmem:[%s2217_s0] sm:$0xff] }
   0x5   :  { %1301 = vmatpush3.bf16.xpose.msk.msra.mxu0 %vm1558_vm1, %v1299_v8  ;;  %1352 = vmatpush3.bf16.xpose.msk.msra.mxu1 %vm1558_vm1, %v1299_v8  ;;  %v1305_v15 = vpack.c.bf16 %v53_v12, %v52_v11  ;;  %v1308_v16 = vpack.c.bf16 %v71_v14, %v70_v13  ;;  %v1603_v18 = vld [vmem:[%s2217_s0 + $0x80] sm:$0xff]  ;;  %v55_v20 = vld [vmem:[%s2218_s1 + $0x28] sm:$0xff]  ;;  %v534_v21 = vld [vmem:[%s2219_s2 + $0x10] sm:$0xff] }
   0x6   :  { %1304 = vmatprep.subr.msk.bf16.mxu0 %vm1558_vm1, %v1302_v10  ;;  %1345 = vmatprep.subr.msk.bf16.mxu1 %vm1558_vm1, %v1302_v10  ;;  %v54_v19 = vld [vmem:[%s2218_s1 + $0x20] sm:$0xff]  ;;  %v72_v23 = vld [vmem:[%s2218_s1 + $0xb0] sm:$0xff]  ;;  %v73_v24 = vld [vmem:[%s2218_s1 + $0xb8] sm:$0xff] }
   0x7   :  { %v532_v22 = vld [vmem:[%s2219_s2] sm:$0xff]  ;;  %1232 = vmatprep.mubr.msk.f32.mxu0 %vm82_vm0, %v1598_v17  ;;  %1264 = vmatprep.mubr.msk.f32.mxu1 %vm82_vm0, %v1603_v18  ;;  %v1311_v25 = vpack.c.bf16 %v55_v20, %v54_v19  ;;  %v535_v26 = vld [vmem:[%s2219_s2 + $0x18] sm:$0xff]  ;;  %v533_v27 = vld [vmem:[%s2219_s2 + $0x8] sm:$0xff]  ;;  %v1314_v28 = vpack.c.bf16 %v73_v24, %v72_v23 }
   0x8   :  { %577 = vperm.xlu1 %1365, %v534_v21   ;;  %567 = vperm.xlu0 %1364, %v532_v22   ;;  %v537_v29 = vld [vmem:[%s2219_s2 + $0x28] sm:$0xff]  ;;  %v536_v30 = vld [vmem:[%s2219_s2 + $0x20] sm:$0xff]  ;;  %v56_v31 = vld [vmem:[%s2218_s1 + $0x30] sm:$0xff] }
   0x9   :  { %v57_v32 = vld [vmem:[%s2218_s1 + $0x38] sm:$0xff]  ;;  %v74_v33 = vld [vmem:[%s2218_s1 + $0xc0] sm:$0xff]  ;;  %v75_v34 = vld [vmem:[%s2218_s1 + $0xc8] sm:$0xff] }
   0xa   :  { %v1317_v35 = vpack.c.bf16 %v57_v32, %v56_v31  ;;  %v539_v36 = vld [vmem:[%s2219_s2 + $0x38] sm:$0xff]  ;;  %v538_v37 = vld [vmem:[%s2219_s2 + $0x30] sm:$0xff]  ;;  %v1320_v38 = vpack.c.bf16 %v75_v34, %v74_v33  ;;  %v541_v39 = vld [vmem:[%s2219_s2 + $0x48] sm:$0xff] }
   0xb   :  { %v540_v40 = vld [vmem:[%s2219_s2 + $0x40] sm:$0xff]  ;;  %v59_v42 = vld [vmem:[%s2218_s1 + $0x48] sm:$0xff]  ;;  %v76_v43 = vld [vmem:[%s2218_s1 + $0xd0] sm:$0xff] }
   0xc   :  { %582 = vperm.xlu1 %1365, %v535_v26   ;;  %572 = vperm.xlu0 %1364, %v533_v27   ;;  %v58_v41 = vld [vmem:[%s2218_s1 + $0x40] sm:$0xff]  ;;  %v77_v44 = vld [vmem:[%s2218_s1 + $0xd8] sm:$0xff]  ;;  %v542_v47 = vld [vmem:[%s2219_s2 + $0x50] sm:$0xff] }
   0xd   :  { %1307 = vmatpush3.bf16.xpose.msk.msra.mxu0 %vm1558_vm1, %v1305_v15  ;;  %1353 = vmatpush3.bf16.xpose.msk.msra.mxu1 %vm1558_vm1, %v1305_v15  ;;  %v1323_v45 = vpack.c.bf16 %v59_v42, %v58_v41  ;;  %v543_v46 = vld [vmem:[%s2219_s2 + $0x58] sm:$0xff] }
   0xe   :  { %1310 = vmatprep.subr.msk.bf16.mxu0 %vm1558_vm1, %v1308_v16  ;;  %1346 = vmatprep.subr.msk.bf16.mxu1 %vm1558_vm1, %v1308_v16 }
  0x10   :  { %592 = vperm.xlu1 %1365, %v537_v29   ;;  %587 = vperm.xlu0 %1364, %v536_v30  }
  0x14   :  { %602 = vperm.xlu1 %1365, %v539_v36   ;;  %597 = vperm.xlu0 %1364, %v538_v37  }
  0x15   :  { %1313 = vmatpush3.bf16.xpose.msk.msra.mxu0 %vm1558_vm1, %v1311_v25  ;;  %1354 = vmatpush3.bf16.xpose.msk.msra.mxu1 %vm1558_vm1, %v1311_v25 }
  0x16   :  { %1316 = vmatprep.subr.msk.bf16.mxu0 %vm1558_vm1, %v1314_v28  ;;  %1347 = vmatprep.subr.msk.bf16.mxu1 %vm1558_vm1, %v1314_v28 }
  0x18   :  { %612 = vperm.xlu1 %1365, %v541_v39   ;;  %607 = vperm.xlu0 %1364, %v540_v40  }
  0x1d   :  { %1319 = vmatpush3.bf16.xpose.msk.msra.mxu0 %vm1558_vm1, %v1317_v35  ;;  %1355 = vmatpush3.bf16.xpose.msk.msra.mxu1 %vm1558_vm1, %v1317_v35 }
  0x1e   :  { %1322 = vmatprep.subr.msk.bf16.mxu0 %vm1558_vm1, %v1320_v38  ;;  %1348 = vmatprep.subr.msk.bf16.mxu1 %vm1558_vm1, %v1320_v38 }
  0x1f   :  { %9 = vsyncpa [#allocation3], 0  ;;  %v1326_v48 = vpack.c.bf16 %v77_v44, %v76_v43  ;;  %622 = vperm.xlu1 %1365, %v543_v46   ;;  %617 = vperm.xlu0 %1364, %v542_v47   ;;  %v545_v49 = vld [vmem:[%s2219_s2 + $0x68] sm:$0xff]  ;;  %v544_v50 = vld [vmem:[%s2219_s2 + $0x60] sm:$0xff] }
  0x20   :  { %v60_v51 = vld [vmem:[%s2218_s1 + $0x50] sm:$0xff]  ;;  %v61_v52 = vld [vmem:[%s2218_s1 + $0x58] sm:$0xff]  ;;  %v78_v53 = vld [vmem:[%s2218_s1 + $0xe0] sm:$0xff] }
  0x21   :  { %v79_v54 = vld [vmem:[%s2218_s1 + $0xe8] sm:$0xff]  ;;  %v1329_v55 = vpack.c.bf16 %v61_v52, %v60_v51  ;;  %v547_v56 = vld [vmem:[%s2219_s2 + $0x78] sm:$0xff]  ;;  %v546_v57 = vld [vmem:[%s2219_s2 + $0x70] sm:$0xff] }
  0x22   :  { %v1332_v58 = vpack.c.bf16 %v79_v54, %v78_v53  ;;  %v549_v59 = vld [vmem:[%s2219_s2 + $0x88] sm:$0xff]  ;;  %v548_v60 = vld [vmem:[%s2219_s2 + $0x80] sm:$0xff]  ;;  %v80_v63 = vld [vmem:[%s2218_s1 + $0xf0] sm:$0xff] }
  0x23   :  { %632 = vperm.xlu1 %1365, %v545_v49   ;;  %627 = vperm.xlu0 %1364, %v544_v50   ;;  %v62_v61 = vld [vmem:[%s2218_s1 + $0x60] sm:$0xff]  ;;  %v63_v62 = vld [vmem:[%s2218_s1 + $0x68] sm:$0xff]  ;;  %v81_v0 = vld [vmem:[%s2218_s1 + $0xf8] sm:$0xff] }
  0x24   :  { %v1335_v1 = vpack.c.bf16 %v63_v62, %v62_v61  ;;  %v551_v2 = vld [vmem:[%s2219_s2 + $0x98] sm:$0xff]  ;;  %v550_v3 = vld [vmem:[%s2219_s2 + $0x90] sm:$0xff]  ;;  %v1338_v5 = vpack.c.bf16 %v81_v0, %v80_v63  ;;  %v553_v6 = vld [vmem:[%s2219_s2 + $0xa8] sm:$0xff] }
  0x25   :  { %1325 = vmatpush3.bf16.xpose.msk.msra.mxu0 %vm1558_vm1, %v1323_v45  ;;  %1356 = vmatpush3.bf16.xpose.msk.msra.mxu1 %vm1558_vm1, %v1323_v45  ;;  %v552_v7 = vld [vmem:[%s2219_s2 + $0xa0] sm:$0xff]  ;;  %v64_v8 = vld [vmem:[%s2218_s1 + $0x70] sm:$0xff]  ;;  %v65_v9 = vld [vmem:[%s2218_s1 + $0x78] sm:$0xff] }
  0x26   :  { %1328 = vmatprep.subr.msk.bf16.mxu0 %vm1558_vm1, %v1326_v48  ;;  %1349 = vmatprep.subr.msk.bf16.mxu1 %vm1558_vm1, %v1326_v48  ;;  %v1341_v10 = vpack.c.bf16 %v65_v9, %v64_v8  ;;  %v555_v11 = vld [vmem:[%s2219_s2 + $0xb8] sm:$0xff]  ;;  %v554_v12 = vld [vmem:[%s2219_s2 + $0xb0] sm:$0xff]  ;;  %v557_v13 = vld [vmem:[%s2219_s2 + $0xc8] sm:$0xff] }
  0x27   :  { %642 = vperm.xlu1 %1365, %v547_v56   ;;  %637 = vperm.xlu0 %1364, %v546_v57   ;;  %v556_v14 = vld [vmem:[%s2219_s2 + $0xc0] sm:$0xff]  ;;  %v19_v15 = vld [vmem:[%s2217_s0 + $0x8] sm:$0xff]  ;;  %v559_v4 = vld [vmem:[%s2219_s2 + $0xd8] sm:$0xff]  ;;  %v726_v57 = vlaneseq }
  0x28   :  { %v35_v16 = vld [vmem:[%s2217_s0 + $0x88] sm:$0xff]  ;;  %v558_v19 = vld [vmem:[%s2219_s2 + $0xd0] sm:$0xff]  ;;  %v21_v22 = vld [vmem:[%s2217_s0 + $0x18] sm:$0xff] }
  0x29   :  { %v20_v20 = vld [vmem:[%s2217_s0 + $0x10] sm:$0xff]  ;;  %v37_v23 = vld [vmem:[%s2217_s0 + $0x98] sm:$0xff]  ;;  %v22_v26 = vld [vmem:[%s2217_s0 + $0x20] sm:$0xff] }
  0x2a   :  { %v36_v21 = vld [vmem:[%s2217_s0 + $0x90] sm:$0xff]  ;;  %v563_v24 = vld [vmem:[%s2219_s2 + $0xf8] sm:$0xff]  ;;  %v38_v27 = vld [vmem:[%s2217_s0 + $0xa0] sm:$0xff] }
  0x2b   :  { %652 = vperm.xlu1 %1365, %v549_v59   ;;  %647 = vperm.xlu0 %1364, %v548_v60   ;;  %v562_v25 = vld [vmem:[%s2219_s2 + $0xf0] sm:$0xff]  ;;  %v23_v28 = vld [vmem:[%s2217_s0 + $0x28] sm:$0xff]  ;;  %v25_v32 = vld [vmem:[%s2217_s0 + $0x38] sm:$0xff]  ;;  %v727_v60 = vshrl.u32 %v726_v57, 7 }
  0x2c   :  { %v39_v29 = vld [vmem:[%s2217_s0 + $0xa8] sm:$0xff]  ;;  %v24_v30 = vld [vmem:[%s2217_s0 + $0x30] sm:$0xff]  ;;  %v41_v33 = vld [vmem:[%s2217_s0 + $0xb8] sm:$0xff] }
  0x2d   :  { %1331 = vmatpush3.bf16.xpose.msk.msra.mxu0 %vm1558_vm1, %v1329_v55  ;;  %1357 = vmatpush3.bf16.xpose.msk.msra.mxu1 %vm1558_vm1, %v1329_v55  ;;  %v40_v31 = vld [vmem:[%s2217_s0 + $0xb0] sm:$0xff]  ;;  %v26_v34 = vld [vmem:[%s2217_s0 + $0x40] sm:$0xff]  ;;  %v27_v36 = vld [vmem:[%s2217_s0 + $0x48] sm:$0xff]  ;;  %v728_v61 = vsub.s32 0, %v727_v60 }
  0x2e   :  { %1334 = vmatprep.subr.msk.bf16.mxu0 %vm1558_vm1, %v1332_v58  ;;  %1350 = vmatprep.subr.msk.bf16.mxu1 %vm1558_vm1, %v1332_v58  ;;  %v42_v35 = vld [vmem:[%s2217_s0 + $0xc0] sm:$0xff]  ;;  %v43_v37 = vld [vmem:[%s2217_s0 + $0xc8] sm:$0xff]  ;;  %v28_v38 = vld [vmem:[%s2217_s0 + $0x50] sm:$0xff] }
  0x2f   :  { %662 = vperm.xlu1 %1365, %v551_v2   ;;  %657 = vperm.xlu0 %1364, %v550_v3   ;;  %v44_v39 = vld [vmem:[%s2217_s0 + $0xd0] sm:$0xff]  ;;  %v29_v40 = vld [vmem:[%s2217_s0 + $0x58] sm:$0xff]  ;;  %v30_v42 = vld [vmem:[%s2217_s0 + $0x60] sm:$0xff] }
  0x30   :  { %v45_v41 = vld [vmem:[%s2217_s0 + $0xd8] sm:$0xff]  ;;  %v46_v43 = vld [vmem:[%s2217_s0 + $0xe0] sm:$0xff]  ;;  %v31_v44 = vld [vmem:[%s2217_s0 + $0x68] sm:$0xff] }
  0x31   :  { %v47_v45 = vld [vmem:[%s2217_s0 + $0xe8] sm:$0xff]  ;;  %v32_v46 = vld [vmem:[%s2217_s0 + $0x70] sm:$0xff]  ;;  %v33_v48 = vld [vmem:[%s2217_s0 + $0x78] sm:$0xff] }
  0x32   :  { %v48_v47 = vld [vmem:[%s2217_s0 + $0xf0] sm:$0xff]  ;;  %v49_v49 = vld [vmem:[%s2217_s0 + $0xf8] sm:$0xff]  ;;  %v564_v0 = vld [vmem:[%s2220_s3] sm:$0x3]  ;;  %s1519_s3 = smov [#allocation2]  }
  0x33   :  { %672 = vperm.xlu1 %1365, %v553_v6   ;;  %667 = vperm.xlu0 %1364, %v552_v7   ;;  %v1988_v2 = vrot.slane %v564_v0, %v728_v61  ;;  %s1125_s21 = sshll.u32 %s1519_s3, 4  ;;  %s1126_s21 = int_to_ptr.vmem [resolvable:$true] %s1125_s21 }
  0x34   :  { %s1494_s22 = scalar_lea.vmem %s1126_s21, 8192  ;;  %p1499_p1 = scmp.lt.s32.totalorder %s1126_s21, %s1126_s21 }
  0x35   :  { %1337 = vmatpush3.bf16.xpose.msk.msra.mxu0 %vm1558_vm1, %v1335_v1  ;;  %1358 = vmatpush3.bf16.xpose.msk.msra.mxu1 %vm1558_vm1, %v1335_v1  ;;  %v732_v1 = vsub.s32 1, %v727_v60  ;;  %p1495_p0 = scmp.ne.s32.totalorder %s1126_s21, %s1494_s22  ;;  %p1500_p2 = scmp.lt.s32.totalorder %s1494_s22, %s1494_s22 }
  0x36   :  { %1340 = vmatprep.subr.msk.bf16.mxu0 %vm1558_vm1, %v1338_v5  ;;  %1351 = vmatprep.subr.msk.bf16.mxu1 %vm1558_vm1, %v1338_v5 }
  0x37   :  { %682 = vperm.xlu1 %1365, %v555_v11   ;;  %677 = vperm.xlu0 %1364, %v554_v12   ;;  %v1990_v3 = vrot.slane %v564_v0, %v732_v1  ;;  %p1501_p3 = por %p1500_p2, %p1499_p1 }
  0x39   :  { %p1502_p4 = pnand %p1501_p3, %p1495_p0 }
  0x3b   :  { %692 = vperm.xlu1 %1365, %v557_v13   ;;  %687 = vperm.xlu0 %1364, %v556_v14  }
  0x3d   :  { %1343 = vmatpush3.bf16.xpose.msk.msra.mxu0 %vm1558_vm1, %v1341_v10  ;;  %1359 = vmatpush3.bf16.xpose.msk.msra.mxu1 %vm1558_vm1, %v1341_v10 }
  0x3f   :  { %702 = vperm.xlu1 %1365, %v559_v4   ;;  %697 = vperm.xlu0 %1364, %v558_v19  }
  0x44   :  { %1233 = vmatmul.mubr.msk.f32.vlgmr.msra.gmra.mrb[0].mxu0 %vm82_vm0, %v1598_v17  ;;  %1265 = vmatmul.mubr.msk.f32.vlgmr.msra.gmra.mrb[0].mxu1 %vm82_vm0, %v1603_v18  ;;  %v561_v17 = vld [vmem:[%s2219_s2 + $0xe8] sm:$0xff]  ;;  %v560_v18 = vld [vmem:[%s2219_s2 + $0xe0] sm:$0xff] }
  0x45   :  { %1234 = vmatprep.mubr.msk.f32.mxu0 %vm82_vm0, %v19_v15  ;;  %1266 = vmatprep.mubr.msk.f32.mxu1 %vm82_vm0, %v35_v16 }
  0x46   :  { %712 = vperm.xlu1 %1365, %v561_v17   ;;  %707 = vperm.xlu0 %1364, %v560_v18  }
  0x48   :  { %1235 = vmatmul.mubr.msk.f32.gmra.mrb[2].mxu0 %vm82_vm0, %v19_v15  ;;  %1267 = vmatmul.mubr.msk.f32.gmra.mrb[2].mxu1 %vm82_vm0, %v35_v16 }
  0x49   :  { %1236 = vmatprep.mubr.msk.f32.mxu0 %vm82_vm0, %v20_v20  ;;  %1268 = vmatprep.mubr.msk.f32.mxu1 %vm82_vm0, %v36_v21 }
  0x4a   :  { %722 = vperm.xlu1 %1365, %v563_v24   ;;  %717 = vperm.xlu0 %1364, %v562_v25  }
  0x4c   :  { %1237 = vmatmul.mubr.msk.f32.gmra.mrb[4].mxu0 %vm82_vm0, %v20_v20  ;;  %1269 = vmatmul.mubr.msk.f32.gmra.mrb[4].mxu1 %vm82_vm0, %v36_v21 }
  0x4d   :  { %1238 = vmatprep.mubr.msk.f32.mxu0 %vm82_vm0, %v21_v22  ;;  %1270 = vmatprep.mubr.msk.f32.mxu1 %vm82_vm0, %v37_v23 }
  0x50   :  { %1239 = vmatmul.mubr.msk.f32.gmra.mrb[6].mxu0 %vm82_vm0, %v21_v22  ;;  %1271 = vmatmul.mubr.msk.f32.gmra.mrb[6].mxu1 %vm82_vm0, %v37_v23 }
  0x51   :  { %1240 = vmatprep.mubr.msk.f32.mxu0 %vm82_vm0, %v22_v26  ;;  %1272 = vmatprep.mubr.msk.f32.mxu1 %vm82_vm0, %v38_v27 }
  0x54   :  { %1241 = vmatmul.mubr.msk.f32.gmra.mrb[8].mxu0 %vm82_vm0, %v22_v26  ;;  %1273 = vmatmul.mubr.msk.f32.gmra.mrb[8].mxu1 %vm82_vm0, %v38_v27 }
  0x55   :  { %1242 = vmatprep.mubr.msk.f32.mxu0 %vm82_vm0, %v23_v28  ;;  %1274 = vmatprep.mubr.msk.f32.mxu1 %vm82_vm0, %v39_v29 }
  0x58   :  { %1243 = vmatmul.mubr.msk.f32.gmra.mrb[10].mxu0 %vm82_vm0, %v23_v28  ;;  %1275 = vmatmul.mubr.msk.f32.gmra.mrb[10].mxu1 %vm82_vm0, %v39_v29 }
  0x59   :  { %1244 = vmatprep.mubr.msk.f32.mxu0 %vm82_vm0, %v24_v30  ;;  %1276 = vmatprep.mubr.msk.f32.mxu1 %vm82_vm0, %v40_v31 }
  0x5c   :  { %1245 = vmatmul.mubr.msk.f32.gmra.mrb[12].mxu0 %vm82_vm0, %v24_v30  ;;  %1277 = vmatmul.mubr.msk.f32.gmra.mrb[12].mxu1 %vm82_vm0, %v40_v31 }
  0x5d   :  { %1246 = vmatprep.mubr.msk.f32.mxu0 %vm82_vm0, %v25_v32  ;;  %1278 = vmatprep.mubr.msk.f32.mxu1 %vm82_vm0, %v41_v33 }
  0x60   :  { %1247 = vmatmul.mubr.msk.f32.gmra.mrb[14].mxu0 %vm82_vm0, %v25_v32  ;;  %1279 = vmatmul.mubr.msk.f32.gmra.mrb[14].mxu1 %vm82_vm0, %v41_v33 }
  0x61   :  { %1248 = vmatprep.mubr.msk.f32.mxu0 %vm82_vm0, %v26_v34  ;;  %1280 = vmatprep.mubr.msk.f32.mxu1 %vm82_vm0, %v42_v35 }
  0x64   :  { %1249 = vmatmul.mubr.msk.f32.gmra.mrb[16].mxu0 %vm82_vm0, %v26_v34  ;;  %1281 = vmatmul.mubr.msk.f32.gmra.mrb[16].mxu1 %vm82_vm0, %v42_v35 }
  0x65   :  { %1250 = vmatprep.mubr.msk.f32.mxu0 %vm82_vm0, %v27_v36  ;;  %1282 = vmatprep.mubr.msk.f32.mxu1 %vm82_vm0, %v43_v37 }
  0x68   :  { %1251 = vmatmul.mubr.msk.f32.gmra.mrb[18].mxu0 %vm82_vm0, %v27_v36  ;;  %1283 = vmatmul.mubr.msk.f32.gmra.mrb[18].mxu1 %vm82_vm0, %v43_v37 }
  0x69   :  { %1252 = vmatprep.mubr.msk.f32.mxu0 %vm82_vm0, %v28_v38  ;;  %1284 = vmatprep.mubr.msk.f32.mxu1 %vm82_vm0, %v44_v39 }
  0x6c   :  { %1253 = vmatmul.mubr.msk.f32.gmra.mrb[20].mxu0 %vm82_vm0, %v28_v38  ;;  %1285 = vmatmul.mubr.msk.f32.gmra.mrb[20].mxu1 %vm82_vm0, %v44_v39 }
  0x6d   :  { %1254 = vmatprep.mubr.msk.f32.mxu0 %vm82_vm0, %v29_v40  ;;  %1286 = vmatprep.mubr.msk.f32.mxu1 %vm82_vm0, %v45_v41 }
  0x70   :  { %1255 = vmatmul.mubr.msk.f32.gmra.mrb[22].mxu0 %vm82_vm0, %v29_v40  ;;  %1287 = vmatmul.mubr.msk.f32.gmra.mrb[22].mxu1 %vm82_vm0, %v45_v41 }
  0x71   :  { %1256 = vmatprep.mubr.msk.f32.mxu0 %vm82_vm0, %v30_v42  ;;  %1288 = vmatprep.mubr.msk.f32.mxu1 %vm82_vm0, %v46_v43 }
  0x74   :  { %1257 = vmatmul.mubr.msk.f32.gmra.mrb[24].mxu0 %vm82_vm0, %v30_v42  ;;  %1289 = vmatmul.mubr.msk.f32.gmra.mrb[24].mxu1 %vm82_vm0, %v46_v43 }
  0x75   :  { %1258 = vmatprep.mubr.msk.f32.mxu0 %vm82_vm0, %v31_v44  ;;  %1290 = vmatprep.mubr.msk.f32.mxu1 %vm82_vm0, %v47_v45 }
  0x78   :  { %1259 = vmatmul.mubr.msk.f32.gmra.mrb[26].mxu0 %vm82_vm0, %v31_v44  ;;  %1291 = vmatmul.mubr.msk.f32.gmra.mrb[26].mxu1 %vm82_vm0, %v47_v45 }
  0x79   :  { %1260 = vmatprep.mubr.msk.f32.mxu0 %vm82_vm0, %v32_v46  ;;  %1292 = vmatprep.mubr.msk.f32.mxu1 %vm82_vm0, %v48_v47 }
  0x7c   :  { %1261 = vmatmul.mubr.msk.f32.gmra.mrb[28].mxu0 %vm82_vm0, %v32_v46  ;;  %1293 = vmatmul.mubr.msk.f32.gmra.mrb[28].mxu1 %vm82_vm0, %v48_v47 }
  0x7d   :  { %1262 = vmatprep.mubr.msk.f32.mxu0 %vm82_vm0, %v33_v48  ;;  %1294 = vmatprep.mubr.msk.f32.mxu1 %vm82_vm0, %v49_v49 }
  0x80   :  { %1263 = vmatmul.mubr.msk.f32.gmra.mrb[30].mxu0 %vm82_vm0, %v33_v48  ;;  %1295 = vmatmul.mubr.msk.f32.gmra.mrb[30].mxu1 %vm82_vm0, %v49_v49 }
  0x87   :  { %v568_v50 = vpop.permute.xlu0 %567  ;;  %v578_v51 = vpop.permute.xlu1 %577 }
  0x88   :  { %v740_v7 = vmul.f32 %v1988_v2, %v578_v51  ;;  %v741_v8 = vmul.f32 %v1990_v3, %v578_v51  ;;  %v736_v9 = vmul.f32 %v1988_v2, %v568_v50  ;;  %v737_v10 = vmul.f32 %v1990_v3, %v568_v50 }
  0x8a   :  { %v804_v11 = vmax.f32 %v740_v7, 1e-08  ;;  %v805_v15 = vmax.f32 %v741_v8, 1e-08  ;;  %v800_v4 = vmax.f32 %v736_v9, 1e-08 }
  0x8b   :  { %v573_v52 = vpop.permute.xlu0 %572  ;;  %v583_v53 = vpop.permute.xlu1 %582  ;;  %v801_v20 = vmax.f32 %v737_v10, 1e-08 }
  0x8c   :  { %v742_v12 = vmul.f32 %v1988_v2, %v583_v53  ;;  %v743_v16 = vmul.f32 %v1990_v3, %v583_v53  ;;  %v738_v19 = vmul.f32 %v1988_v2, %v573_v52  ;;  %v739_v21 = vmul.f32 %v1990_v3, %v573_v52 }
  0x8d   :  { %1366 = vrcp.f32 %v804_v11 }
  0x8e   :  { %v806_v17 = vmax.f32 %v742_v12, 1e-08  ;;  %1368 = vrcp.f32 %v805_v15  ;;  %v807_v22 = vmax.f32 %v743_v16, 1e-08  ;;  %v802_v24 = vmax.f32 %v738_v19, 1e-08 }
  0x8f   :  { %v588_v54 = vpop.permute.xlu0 %587  ;;  %v593_v55 = vpop.permute.xlu1 %592  ;;  %1370 = vrcp.f32 %v800_v4  ;;  %v803_v28 = vmax.f32 %v739_v21, 1e-08 }
  0x90   :  { %v746_v18 = vmul.f32 %v1988_v2, %v593_v55  ;;  %v747_v23 = vmul.f32 %v1990_v3, %v593_v55  ;;  %v744_v25 = vmul.f32 %v1988_v2, %v588_v54  ;;  %1372 = vrcp.f32 %v801_v20 }
  0x91   :  { %1374 = vrcp.f32 %v806_v17  ;;  %v745_v33 = vmul.f32 %v1990_v3, %v588_v54 }
  0x92   :  { %v810_v30 = vmax.f32 %v746_v18, 1e-08  ;;  %1376 = vrcp.f32 %v807_v22  ;;  %v811_v32 = vmax.f32 %v747_v23, 1e-08  ;;  %v808_v34 = vmax.f32 %v744_v25, 1e-08 }
  0x93   :  { %v1977_v56 = vpop.permute.xlu0 %597  ;;  %v603_v58 = vpop.permute.xlu1 %602  ;;  %1378 = vrcp.f32 %v802_v24  ;;  %v809_v41 = vmax.f32 %v745_v33, 1e-08 }
  0x94   :  { %v750_v35 = vmul.f32 %v1988_v2, %v603_v58  ;;  %1380 = vrcp.f32 %v803_v28  ;;  %v751_v36 = vmul.f32 %v1990_v3, %v603_v58  ;;  %v748_v38 = vmul.f32 %v1988_v2, %v1977_v56 }
  0x95   :  { %1382 = vrcp.f32 %v810_v30  ;;  %v749_v48 = vmul.f32 %v1990_v3, %v1977_v56 }
  0x96   :  { %1384 = vrcp.f32 %v811_v32  ;;  %v814_v44 = vmax.f32 %v750_v35, 1e-08  ;;  %v815_v47 = vmax.f32 %v751_v36, 1e-08  ;;  %v812_v50 = vmax.f32 %v748_v38, 1e-08 }
  0x97   :  { %v1979_v59 = vpop.permute.xlu0 %607  ;;  %v1981_v62 = vpop.permute.xlu1 %612  ;;  %1386 = vrcp.f32 %v808_v34  ;;  %v813_v56 = vmax.f32 %v749_v48, 1e-08 }
  0x98   :  { %v1367_v43 = vpop.eup %1366  ;;  %v754_v51 = vmul.f32 %v1988_v2, %v1981_v62  ;;  %v755_v0 = vmul.f32 %v1990_v3, %v1981_v62  ;;  %v752_v8 = vmul.f32 %v1988_v2, %v1979_v59  ;;  %v753_v9 = vmul.f32 %v1990_v3, %v1979_v59 }
  0x99   :  { %v1369_v46 = vpop.eup %1368  ;;  %v2040_v19 = vmul.f32 20.0, %v1367_v43 }
  0x9a   :  { %v1371_v49 = vpop.eup %1370  ;;  %v818_v7 = vmax.f32 %v754_v51, 1e-08  ;;  %v819_v21 = vmax.f32 %v755_v0, 1e-08  ;;  %v2044_v17 = vmul.f32 20.0, %v1369_v46 }
  0x9b   :  { %v1373_v53 = vpop.eup %1372  ;;  %v928_v59 = vmul.f32 20.0, %v1371_v49  ;;  %v816_v22 = vmax.f32 %v752_v8, 1e-08  ;;  %v817_v23 = vmax.f32 %v753_v9, 1e-08 }
  0x9c   :  { %v1375_v57 = vpop.eup %1374  ;;  %v929_v25 = vmul.f32 20.0, %v1373_v53 }
  0x9d   :  { %v1377_v61 = vpop.eup %1376  ;;  %v2049_v30 = vmul.f32 20.0, %v1375_v57 }
  0x9e   :  { %v1983_v63 = vpop.permute.xlu0 %617  ;;  %v1992_v5 = vpop.permute.xlu1 %622  ;;  %v2073_v46 = vmul.f32 20.0, %v1377_v61 }
  0x9f   :  { %v1379_v1 = vpop.eup %1378  ;;  %v758_v32 = vmul.f32 %v1988_v2, %v1992_v5  ;;  %v2058_v36 = vmul.f32 %v1990_v3, %v1992_v5  ;;  %v2066_v38 = vmul.f32 %v1990_v3, %v1983_v63 }
  0xa0   :  { %v2034_v11 = vpop.eup %1380  ;;  %v930_v43 = vmul.f32 20.0, %v1379_v1 }
  0xa1   :  { %v2037_v16 = vpop.eup %1382  ;;  %v822_v48 = vmax.f32 %v758_v32, 1e-08 }
  0xa2   :  { %v1994_v6 = vpop.permute.xlu0 %627  ;;  %v2001_v13 = vpop.permute.xlu1 %632 }
  0xa3   :  { %v2042_v20 = vpop.eup %1384 }
  0xa4   :  { %v2046_v18 = vpop.eup %1386 }
  0xa6   :  { %v2003_v14 = vpop.permute.xlu0 %637  ;;  %v2011_v26 = vpop.permute.xlu1 %642 }
  0xaa   :  { %v648_v27 = vpop.permute.xlu0 %647  ;;  %v653_v39 = vpop.permute.xlu1 %652 }
  0xab   :  { %v768_v29 = vmul.f32 %v1988_v2, %v648_v27  ;;  %v769_v31 = vmul.f32 %v1990_v3, %v648_v27  ;;  %v770_v42 = vmul.f32 %v1988_v2, %v653_v39  ;;  %v771_v45 = vmul.f32 %v1990_v3, %v653_v39 }
  0xad   :  { %v832_v37 = vmax.f32 %v768_v29, 1e-08  ;;  %v833_v40 = vmax.f32 %v769_v31, 1e-08  ;;  %v834_v54 = vmax.f32 %v770_v42, 1e-08 }
  0xae   :  { %v658_v52 = vpop.permute.xlu0 %657  ;;  %v835_v58 = vmax.f32 %v771_v45, 1e-08  ;;  %v663_v10 = vpop.permute.xlu1 %662 }
  0xaf   :  { %1388 = vrcp.f32 %v832_v37  ;;  %v772_v55 = vmul.f32 %v1988_v2, %v658_v52  ;;  %v773_v60 = vmul.f32 %v1990_v3, %v658_v52  ;;  %v774_v12 = vmul.f32 %v1988_v2, %v663_v10 }
  0xb0   :  { %1390 = vrcp.f32 %v833_v40  ;;  %v775_v62 = vmul.f32 %v1990_v3, %v663_v10  ;;  %v2062_v37 = vmul.f32 %v1988_v2, %v1983_v63  ;;  %v823_v52 = vmax.f32 %v2058_v36, 1e-08 }
  0xb1   :  { %1392 = vrcp.f32 %v809_v41  ;;  %v836_v15 = vmax.f32 %v772_v55, 1e-08  ;;  %v837_v4 = vmax.f32 %v773_v60, 1e-08  ;;  %v838_v28 = vmax.f32 %v774_v12, 1e-08 }
  0xb2   :  { %1394 = vrcp.f32 %v814_v44  ;;  %v668_v24 = vpop.permute.xlu0 %667  ;;  %v839_v33 = vmax.f32 %v775_v62, 1e-08  ;;  %v673_v39 = vpop.permute.xlu1 %672  ;;  %v820_v53 = vmax.f32 %v2062_v37, 1e-08 }
  0xb3   :  { %1396 = vrcp.f32 %v815_v47  ;;  %v776_v29 = vmul.f32 %v1988_v2, %v668_v24  ;;  %v777_v34 = vmul.f32 %v1990_v3, %v668_v24  ;;  %v778_v41 = vmul.f32 %v1988_v2, %v673_v39 }
  0xb4   :  { %1398 = vrcp.f32 %v812_v50  ;;  %v779_v63 = vmul.f32 %v1990_v3, %v673_v39  ;;  %v931_v24 = vmul.f32 20.0, %v2034_v11 }
  0xb5   :  { %1400 = vrcp.f32 %v834_v54  ;;  %v840_v5 = vmax.f32 %v776_v29, 1e-08  ;;  %v841_v49 = vmax.f32 %v777_v34, 1e-08  ;;  %v842_v60 = vmax.f32 %v778_v41, 1e-08 }
  0xb6   :  { %1402 = vrcp.f32 %v835_v58  ;;  %v678_v50 = vpop.permute.xlu0 %677  ;;  %v821_v58 = vmax.f32 %v2066_v38, 1e-08  ;;  %v683_v62 = vpop.permute.xlu1 %682  ;;  %v2093_v29 = vmul.f32 %v1988_v2, %v2001_v13 }
  0xb7   :  { %1404 = vrcp.f32 %v813_v56  ;;  %v780_v8 = vmul.f32 %v1988_v2, %v678_v50 }
  0xb8   :  { %1406 = vrcp.f32 %v818_v7 }
  0xb9   :  { %v1389_v27 = vpop.eup %1388  ;;  %1408 = vrcp.f32 %v836_v15  ;;  %v843_v15 = vmax.f32 %v779_v63, 1e-08  ;;  %v844_v11 = vmax.f32 %v780_v8, 1e-08 }
  0xba   :  { %v1391_v31 = vpop.eup %1390  ;;  %1410 = vrcp.f32 %v837_v4  ;;  %v960_v42 = vmul.f32 20.0, %v1389_v27  ;;  %v781_v4 = vmul.f32 %v1990_v3, %v678_v50  ;;  %v2089_v27 = vmul.f32 20.0, %v2037_v16 }
  0xbb   :  { %v2054_v35 = vpop.eup %1392  ;;  %1412 = vrcp.f32 %v819_v21  ;;  %v961_v45 = vmul.f32 20.0, %v1391_v31  ;;  %v2096_v31 = vmul.f32 %v1988_v2, %v683_v62  ;;  %v2109_v50 = vmul.f32 %v1988_v2, %v1994_v6 }
  0xbc   :  { %v2068_v40 = vpop.eup %1394  ;;  %1414 = vrcp.f32 %v816_v22 }
  0xbd   :  { %v2071_v44 = vpop.eup %1396  ;;  %1416 = vrcp.f32 %v838_v28 }
  0xbe   :  { %v2075_v47 = vpop.eup %1398  ;;  %1418 = vrcp.f32 %v839_v33 }
  0xbf   :  { %v1401_v51 = vpop.eup %1400  ;;  %1420 = vrcp.f32 %v817_v23 }
  0xc0   :  { %v1403_v57 = vpop.eup %1402  ;;  %1422 = vrcp.f32 %v840_v5  ;;  %v962_v21 = vmul.f32 20.0, %v1401_v51  ;;  %v783_v5 = vmul.f32 %v1990_v3, %v683_v62  ;;  %v693_v62 = vpop.permute.xlu1 %692 }
  0xc1   :  { %v2081_v7 = vpop.eup %1404  ;;  %1424 = vrcp.f32 %v841_v49  ;;  %v2105_v49 = vmul.f32 %v1990_v3, %v2001_v13  ;;  %v936_v13 = vmul.f32 20.0, %v2046_v18  ;;  %v2122_v18 = vmul.f32 %v1990_v3, %v1994_v6 }
  0xc2   :  { %v2084_v12 = vpop.eup %1406  ;;  %1426 = vrcp.f32 %v822_v48  ;;  %v688_v48 = vpop.permute.xlu0 %687 }
  0xc3   :  { %1428 = vrcp.f32 %v842_v60  ;;  %v846_v60 = vmax.f32 %v2096_v31, 1e-08  ;;  %v784_v8 = vmul.f32 %v1988_v2, %v688_v48  ;;  %v786_v31 = vmul.f32 %v1988_v2, %v693_v62 }
  0xc4   :  { %1430 = vrcp.f32 %v843_v15  ;;  %v847_v15 = vmax.f32 %v783_v5, 1e-08 }
  0xc5   :  { %1432 = vrcp.f32 %v823_v52 }
  0xc6   :  { %1434 = vrcp.f32 %v844_v11  ;;  %v698_v5 = vpop.permute.xlu0 %697 }
 0x117   :  { %v341_v54 = vpop.f32.mrb[0].mxu0  ;;  %v437_v55 = vpop.f32.mrb[0].mxu1 }
 0x118   :  { %v992_v61 = vmul.f32 %v928_v59, %v341_v54  ;;  %v1024_v56 = vmul.f32 %v960_v42, %v437_v55  ;;  %v343_v0 = vpop.f32.mrb[1].mxu0  ;;  %v439_v1 = vpop.f32.mrb[1].mxu1 }
 0x119   :  { %v993_v9 = vmul.f32 %v929_v25, %v343_v0  ;;  %v1025_v10 = vmul.f32 %v961_v45, %v439_v1  ;;  %v1409_v59 = vpop.eup %1408  ;;  %v963_v25 = vmul.f32 20.0, %v1403_v57  ;;  %v845_v45 = vmax.f32 %v781_v4, 1e-08 }
 0x11a   :  { %1056 = vst [vmem:[#allocation2] sm:$0xff] %v992_v61  ;;  %1088 = vst [vmem:[#allocation2 + $0x100] sm:$0xff] %v1024_v56  ;;  %v1411_v28 = vpop.eup %1410  ;;  %v964_v63 = vmul.f32 20.0, %v1409_v59  ;;  %v785_v4 = vmul.f32 %v1990_v3, %v688_v48  ;;  %v826_v59 = vmax.f32 %v2093_v29, 1e-08 }
 0x11b   :  { %1057 = vst [vmem:[#allocation2 + $0x8] sm:$0xff] %v993_v9  ;;  %1089 = vst [vmem:[#allocation2 + $0x108] sm:$0xff] %v1025_v10  ;;  %v347_v22 = vpop.f32.mrb[2].mxu0  ;;  %v443_v23 = vpop.f32.mrb[2].mxu1  ;;  %v965_v55 = vmul.f32 20.0, %v1411_v28  ;;  %1436 = vrcp.f32 %v845_v45 }
 0x11c   :  { %v994_v32 = vmul.f32 %v930_v43, %v347_v22  ;;  %v1026_v33 = vmul.f32 %v962_v21, %v443_v23  ;;  %v349_v34 = vpop.f32.mrb[3].mxu0  ;;  %v445_v36 = vpop.f32.mrb[3].mxu1  ;;  %v827_v28 = vmax.f32 %v2105_v49, 1e-08  ;;  %1438 = vrcp.f32 %v846_v60 }
 0x11d   :  { %v2098_v39 = vpop.eup %1412  ;;  %v995_v41 = vmul.f32 %v931_v24, %v349_v34  ;;  %v1027_v42 = vmul.f32 %v963_v25, %v445_v36  ;;  %v2125_v24 = vmul.f32 20.0, %v2042_v20  ;;  %v848_v36 = vmax.f32 %v784_v8, 1e-08 }
 0x11e   :  { %v2100_v16 = vpop.eup %1414  ;;  %1058 = vst [vmem:[#allocation2 + $0x10] sm:$0xff] %v994_v32  ;;  %1090 = vst [vmem:[#allocation2 + $0x110] sm:$0xff] %v1026_v33  ;;  %1440 = vrcp.f32 %v847_v15  ;;  %v787_v20 = vmul.f32 %v1990_v3, %v693_v62 }
 0x11f   :  { %v1417_v43 = vpop.eup %1416  ;;  %1059 = vst [vmem:[#allocation2 + $0x18] sm:$0xff] %v995_v41  ;;  %1091 = vst [vmem:[#allocation2 + $0x118] sm:$0xff] %v1027_v42  ;;  %v353_v51 = vpop.f32.mrb[4].mxu0  ;;  %v849_v42 = vmax.f32 %v785_v4, 1e-08  ;;  %1442 = vrcp.f32 %v820_v53  ;;  %v788_v53 = vmul.f32 %v1988_v2, %v698_v5  ;;  %v942_v4 = vmul.f32 20.0, %v2068_v40 }
 0x120   :  { %v449_v54 = vpop.f32.mrb[4].mxu1  ;;  %v1419_v57 = vpop.eup %1418  ;;  %v996_v61 = vmul.f32 %v2040_v19, %v353_v51  ;;  %v966_v19 = vmul.f32 20.0, %v1417_v43  ;;  %1444 = vrcp.f32 %v821_v58  ;;  %v851_v8 = vmax.f32 %v787_v20, 1e-08 }
 0x121   :  { %v1028_v56 = vmul.f32 %v964_v63, %v449_v54  ;;  %v355_v52 = vpop.f32.mrb[5].mxu0  ;;  %v451_v0 = vpop.f32.mrb[5].mxu1  ;;  %v967_v23 = vmul.f32 20.0, %v1419_v57  ;;  %1446 = vrcp.f32 %v848_v36  ;;  %v941_v20 = vmul.f32 20.0, %v2081_v7 }
 0x122   :  { %v2114_v1 = vpop.eup %1420  ;;  %v997_v9 = vmul.f32 %v2044_v17, %v355_v52  ;;  %v1029_v10 = vmul.f32 %v965_v55, %v451_v0  ;;  %1060 = vst [vmem:[#allocation2 + $0x20] sm:$0xff] %v996_v61  ;;  %v850_v55 = vmax.f32 %v786_v31, 1e-08  ;;  %1448 = vrcp.f32 %v849_v42 }
 0x123   :  { %1092 = vst [vmem:[#allocation2 + $0x120] sm:$0xff] %v1028_v56  ;;  %v1423_v21 = vpop.eup %1422  ;;  %v359_v22 = vpop.f32.mrb[6].mxu0  ;;  %1450 = vrcp.f32 %v826_v59  ;;  %v940_v59 = vmul.f32 20.0, %v2075_v47  ;;  %v852_v31 = vmax.f32 %v788_v53, 1e-08  ;;  %v2159_v47 = vmul.f32 %v1990_v3, %v2011_v26 }
 0x124   :  { %1061 = vst [vmem:[#allocation2 + $0x28] sm:$0xff] %v997_v9  ;;  %1093 = vst [vmem:[#allocation2 + $0x128] sm:$0xff] %v1029_v10  ;;  %v455_v17 = vpop.f32.mrb[6].mxu1  ;;  %v1425_v25 = vpop.eup %1424  ;;  %v998_v32 = vmul.f32 %v2049_v30, %v359_v22  ;;  %v968_v45 = vmul.f32 20.0, %v1423_v21  ;;  %v824_v30 = vmax.f32 %v2109_v50, 1e-08  ;;  %v789_v9 = vmul.f32 %v1990_v3, %v698_v5 }
 0x125   :  { %v1030_v29 = vmul.f32 %v966_v19, %v455_v17  ;;  %v361_v33 = vpop.f32.mrb[7].mxu0  ;;  %v457_v34 = vpop.f32.mrb[7].mxu1  ;;  %v969_v51 = vmul.f32 20.0, %v1425_v25  ;;  %1452 = vrcp.f32 %v850_v55  ;;  %v944_v50 = vmul.f32 20.0, %v2100_v16 }
 0x126   :  { %v2130_v6 = vpop.eup %1426  ;;  %v999_v11 = vmul.f32 %v2073_v46, %v361_v33  ;;  %v1031_v41 = vmul.f32 %v967_v23, %v457_v34  ;;  %1062 = vst [vmem:[#allocation2 + $0x30] sm:$0xff] %v998_v32  ;;  %v937_v46 = vmul.f32 20.0, %v2054_v35  ;;  %v703_v35 = vpop.permute.xlu1 %702  ;;  %1454 = vrcp.f32 %v851_v8 }
 0x127   :  { %1094 = vst [vmem:[#allocation2 + $0x130] sm:$0xff] %v1030_v29  ;;  %v1429_v48 = vpop.eup %1428  ;;  %v365_v63 = vpop.f32.mrb[8].mxu0  ;;  %v2147_v21 = vmul.f32 %v1988_v2, %v703_v35  ;;  %v791_v33 = vmul.f32 %v1990_v3, %v703_v35  ;;  %v853_v40 = vmax.f32 %v789_v9, 1e-08  ;;  %1456 = vrcp.f32 %v852_v31 }
 0x128   :  { %1063 = vst [vmem:[#allocation2 + $0x38] sm:$0xff] %v999_v11  ;;  %1095 = vst [vmem:[#allocation2 + $0x138] sm:$0xff] %v1031_v41  ;;  %v461_v43 = vpop.f32.mrb[8].mxu1  ;;  %v1431_v54 = vpop.eup %1430  ;;  %v1000_v57 = vmul.f32 %v936_v13, %v365_v63  ;;  %v970_v38 = vmul.f32 20.0, %v1429_v48  ;;  %v825_v13 = vmax.f32 %v2122_v18, 1e-08 }
 0x129   :  { %v1032_v60 = vmul.f32 %v968_v45, %v461_v43  ;;  %v367_v61 = vpop.f32.mrb[9].mxu0  ;;  %v463_v56 = vpop.f32.mrb[9].mxu1  ;;  %v971_v62 = vmul.f32 20.0, %v1431_v54  ;;  %v2164_v45 = vmul.f32 %v1988_v2, %v2003_v14  ;;  %v854_v48 = vmax.f32 %v2147_v21, 1e-08 }
 0x12a   :  { %v2140_v37 = vpop.eup %1432  ;;  %v1001_v52 = vmul.f32 %v937_v46, %v367_v61  ;;  %v1033_v0 = vmul.f32 %v969_v51, %v463_v56  ;;  %1064 = vst [vmem:[#allocation2 + $0x40] sm:$0xff] %v1000_v57  ;;  %v708_v34 = vpop.permute.xlu0 %707  ;;  %1458 = vrcp.f32 %v853_v40  ;;  %v943_v9 = vmul.f32 20.0, %v2071_v44 }
 0x12b   :  { %1096 = vst [vmem:[#allocation2 + $0x140] sm:$0xff] %v1032_v60  ;;  %v1435_v58 = vpop.eup %1434  ;;  %v371_v10 = vpop.f32.mrb[10].mxu0  ;;  %v792_v54 = vmul.f32 %v1988_v2, %v708_v34  ;;  %v855_v60 = vmax.f32 %v791_v33, 1e-08  ;;  %v793_v56 = vmul.f32 %v1990_v3, %v708_v34  ;;  %1460 = vrcp.f32 %v824_v30 }
 0x12c   :  { %1065 = vst [vmem:[#allocation2 + $0x48] sm:$0xff] %v1001_v52  ;;  %1097 = vst [vmem:[#allocation2 + $0x148] sm:$0xff] %v1033_v0  ;;  %v467_v15 = vpop.f32.mrb[10].mxu1  ;;  %v1437_v19 = vpop.eup %1436  ;;  %v1002_v22 = vmul.f32 %v2089_v27, %v371_v10  ;;  %v972_v36 = vmul.f32 20.0, %v1435_v58  ;;  %v2155_v27 = vmul.f32 %v1988_v2, %v2011_v26  ;;  %v2177_v0 = vmul.f32 %v1990_v3, %v2003_v14 }
 0x12d   :  { %v1034_v17 = vmul.f32 %v970_v38, %v467_v15  ;;  %v373_v23 = vpop.f32.mrb[11].mxu0  ;;  %v469_v25 = vpop.f32.mrb[11].mxu1  ;;  %v973_v42 = vmul.f32 20.0, %v1437_v19  ;;  %1462 = vrcp.f32 %v854_v48  ;;  %v856_v14 = vmax.f32 %v792_v54, 1e-08 }
 0x12e   :  { %v1003_v32 = vmul.f32 %v2125_v24, %v373_v23  ;;  %v1035_v29 = vmul.f32 %v971_v62, %v469_v25  ;;  %1066 = vst [vmem:[#allocation2 + $0x50] sm:$0xff] %v1002_v22  ;;  %v1439_v11 = vpop.eup %1438  ;;  %v713_v61 = vpop.permute.xlu1 %712  ;;  %1464 = vrcp.f32 %v855_v60  ;;  %v857_v44 = vmax.f32 %v793_v56, 1e-08 }
 0x12f   :  { %1098 = vst [vmem:[#allocation2 + $0x150] sm:$0xff] %v1034_v17  ;;  %v377_v24 = vpop.f32.mrb[12].mxu0  ;;  %v473_v41 = vpop.f32.mrb[12].mxu1  ;;  %v974_v53 = vmul.f32 20.0, %v1439_v11  ;;  %v794_v10 = vmul.f32 %v1988_v2, %v713_v61  ;;  %v795_v23 = vmul.f32 %v1990_v3, %v713_v61  ;;  %1466 = vrcp.f32 %v825_v13 }
 0x130   :  { %1067 = vst [vmem:[#allocation2 + $0x58] sm:$0xff] %v1003_v32  ;;  %1099 = vst [vmem:[#allocation2 + $0x158] sm:$0xff] %v1035_v29  ;;  %v1441_v5 = vpop.eup %1440  ;;  %v1004_v63 = vmul.f32 %v940_v59, %v377_v24  ;;  %v1036_v43 = vmul.f32 %v972_v36, %v473_v41  ;;  %v379_v46 = vpop.f32.mrb[13].mxu0  ;;  %v828_v16 = vmax.f32 %v2164_v45, 1e-08  ;;  %v945_v29 = vmul.f32 20.0, %v2114_v1 }
 0x131   :  { %v475_v51 = vpop.f32.mrb[13].mxu1  ;;  %v2167_v26 = vpop.eup %1442  ;;  %v1005_v55 = vmul.f32 %v941_v20, %v379_v46  ;;  %v975_v38 = vmul.f32 20.0, %v1441_v5  ;;  %v858_v34 = vmax.f32 %v794_v10, 1e-08  ;;  %v946_v20 = vmul.f32 20.0, %v2084_v12 }
 0x132   :  { %v1037_v57 = vmul.f32 %v973_v42, %v475_v51  ;;  %v2170_v7 = vpop.eup %1444  ;;  %1068 = vst [vmem:[#allocation2 + $0x60] sm:$0xff] %v1004_v63  ;;  %1100 = vst [vmem:[#allocation2 + $0x160] sm:$0xff] %v1036_v43  ;;  %v718_v25 = vpop.permute.xlu0 %717  ;;  %1468 = vrcp.f32 %v856_v14  ;;  %v859_v5 = vmax.f32 %v795_v23, 1e-08  ;;  %v829_v43 = vmax.f32 %v2177_v0, 1e-08 }
 0x133   :  { %v1447_v52 = vpop.eup %1446  ;;  %1069 = vst [vmem:[#allocation2 + $0x68] sm:$0xff] %v1005_v55  ;;  %v383_v8 = vpop.f32.mrb[14].mxu0  ;;  %v796_v18 = vmul.f32 %v1988_v2, %v718_v25  ;;  %1470 = vrcp.f32 %v857_v44  ;;  %v797_v48 = vmul.f32 %v1990_v3, %v718_v25  ;;  %v947_v51 = vmul.f32 20.0, %v2098_v39 }
 0x134   :  { %1101 = vst [vmem:[#allocation2 + $0x168] sm:$0xff] %v1037_v57  ;;  %v479_v35 = vpop.f32.mrb[14].mxu1  ;;  %v1449_v58 = vpop.eup %1448  ;;  %v1006_v15 = vmul.f32 %v942_v4, %v383_v8  ;;  %v976_v59 = vmul.f32 20.0, %v1447_v52  ;;  %1472 = vrcp.f32 %v827_v28 }
 0x135   :  { %v1038_v62 = vmul.f32 %v974_v53, %v479_v35  ;;  %v385_v19 = vpop.f32.mrb[15].mxu0  ;;  %v481_v21 = vpop.f32.mrb[15].mxu1  ;;  %v977_v33 = vmul.f32 20.0, %v1449_v58  ;;  %1474 = vrcp.f32 %v858_v34  ;;  %v948_v53 = vmul.f32 20.0, %v2167_v26 }
 0x136   :  { %v2182_v30 = vpop.eup %1450  ;;  %v1007_v22 = vmul.f32 %v943_v9, %v385_v19  ;;  %v1039_v17 = vmul.f32 %v975_v38, %v481_v21  ;;  %1070 = vst [vmem:[#allocation2 + $0x70] sm:$0xff] %v1006_v15  ;;  %v723_v45 = vpop.permute.xlu1 %722  ;;  %v860_v28 = vmax.f32 %v796_v18, 1e-08  ;;  %1476 = vrcp.f32 %v859_v5 }
 0x137   :  { %1102 = vst [vmem:[#allocation2 + $0x170] sm:$0xff] %v1038_v62  ;;  %v1453_v4 = vpop.eup %1452  ;;  %v389_v31 = vpop.f32.mrb[16].mxu0  ;;  %v798_v49 = vmul.f32 %v1988_v2, %v723_v45  ;;  %v799_v35 = vmul.f32 %v1990_v3, %v723_v45  ;;  %v861_v9 = vmax.f32 %v797_v48, 1e-08  ;;  %v830_v58 = vmax.f32 %v2155_v27, 1e-08 }
 0x138   :  { %1071 = vst [vmem:[#allocation2 + $0x78] sm:$0xff] %v1007_v22  ;;  %1103 = vst [vmem:[#allocation2 + $0x178] sm:$0xff] %v1039_v17  ;;  %v485_v32 = vpop.f32.mrb[16].mxu1  ;;  %v1455_v40 = vpop.eup %1454  ;;  %v1008_v36 = vmul.f32 %v944_v50, %v389_v31  ;;  %v978_v1 = vmul.f32 20.0, %v1453_v4  ;;  %1478 = vrcp.f32 %v828_v16  ;;  %v949_v2 = vmul.f32 20.0, %v2170_v7 }
 0x139   :  { %v1040_v11 = vmul.f32 %v976_v59, %v485_v32  ;;  %v391_v24 = vpop.f32.mrb[17].mxu0  ;;  %v487_v41 = vpop.f32.mrb[17].mxu1  ;;  %v979_v54 = vmul.f32 20.0, %v1455_v40  ;;  %v831_v19 = vmax.f32 %v2159_v47, 1e-08  ;;  %1480 = vrcp.f32 %v829_v43 }
 0x13a   :  { %v1009_v13 = vmul.f32 %v945_v29, %v391_v24  ;;  %v1041_v42 = vmul.f32 %v977_v33, %v487_v41  ;;  %1072 = vst [vmem:[#allocation2 + $0x80] sm:$0xff] %v1008_v36  ;;  %v1457_v63 = vpop.eup %1456  ;;  %v862_v17 = vmax.f32 %v798_v49, 1e-08  ;;  %1482 = vrcp.f32 %v860_v28 }
 0x13b   :  { %1104 = vst [vmem:[#allocation2 + $0x180] sm:$0xff] %v1040_v11  ;;  %v395_v12 = vpop.f32.mrb[18].mxu0  ;;  %v491_v46 = vpop.f32.mrb[18].mxu1  ;;  %v980_v39 = vmul.f32 20.0, %v1457_v63  ;;  %v863_v44 = vmax.f32 %v799_v35, 1e-08  ;;  %1484 = vrcp.f32 %v861_v9 }
 0x13c   :  { %1073 = vst [vmem:[#allocation2 + $0x88] sm:$0xff] %v1009_v13  ;;  %1105 = vst [vmem:[#allocation2 + $0x188] sm:$0xff] %v1041_v42  ;;  %v1459_v55 = vpop.eup %1458  ;;  %v1010_v57 = vmul.f32 %v946_v20, %v395_v12  ;;  %v1042_v60 = vmul.f32 %v978_v1, %v491_v46  ;;  %v397_v61 = vpop.f32.mrb[19].mxu0  ;;  %v950_v7 = vmul.f32 20.0, %v2130_v6  ;;  %1486 = vrcp.f32 %v830_v58 }
 0x13d   :  { %v493_v56 = vpop.f32.mrb[19].mxu1  ;;  %v1461_v52 = vpop.eup %1460  ;;  %v1011_v0 = vmul.f32 %v947_v51, %v397_v61  ;;  %v981_v15 = vmul.f32 20.0, %v1459_v55  ;;  %v951_v16 = vmul.f32 20.0, %v2140_v37  ;;  %1488 = vrcp.f32 %v831_v19 }
 0x13e   :  { %v1043_v8 = vmul.f32 %v979_v54, %v493_v56  ;;  %1074 = vst [vmem:[#allocation2 + $0x90] sm:$0xff] %v1010_v57  ;;  %1106 = vst [vmem:[#allocation2 + $0x190] sm:$0xff] %v1042_v60  ;;  %v1463_v38 = vpop.eup %1462  ;;  %1490 = vrcp.f32 %v862_v17  ;;  %v952_v41 = vmul.f32 20.0, %v1461_v52  ;;  %v954_v54 = vmul.f32 20.0, %v2182_v30 }
 0x13f   :  { %1075 = vst [vmem:[#allocation2 + $0x98] sm:$0xff] %v1011_v0  ;;  %v401_v26 = vpop.f32.mrb[20].mxu0  ;;  %v497_v10 = vpop.f32.mrb[20].mxu1  ;;  %v982_v25 = vmul.f32 20.0, %v1463_v38  ;;  %1492 = vrcp.f32 %v863_v44 }
 0x140   :  { %1107 = vst [vmem:[#allocation2 + $0x198] sm:$0xff] %v1043_v8  ;;  %v1465_v62 = vpop.eup %1464  ;;  %v1012_v3 = vmul.f32 %v948_v53, %v401_v26  ;;  %v1044_v21 = vmul.f32 %v980_v39, %v497_v10  ;;  %v403_v50 = vpop.f32.mrb[21].mxu0 }
 0x141   :  { %v499_v14 = vpop.f32.mrb[21].mxu1  ;;  %v1467_v22 = vpop.eup %1466  ;;  %v1013_v27 = vmul.f32 %v949_v2, %v403_v50  ;;  %v983_v31 = vmul.f32 20.0, %v1465_v62 }
 0x142   :  { %v1045_v23 = vmul.f32 %v981_v15, %v499_v14  ;;  %1076 = vst [vmem:[#allocation2 + $0xa0] sm:$0xff] %v1012_v3  ;;  %1108 = vst [vmem:[#allocation2 + $0x1a0] sm:$0xff] %v1044_v21  ;;  %v1469_v59 = vpop.eup %1468  ;;  %v953_v13 = vmul.f32 20.0, %v1467_v22 }
 0x143   :  { %1077 = vst [vmem:[#allocation2 + $0xa8] sm:$0xff] %v1013_v27  ;;  %v407_v47 = vpop.f32.mrb[22].mxu0  ;;  %v503_v4 = vpop.f32.mrb[22].mxu1  ;;  %v984_v20 = vmul.f32 20.0, %v1469_v59 }
 0x144   :  { %1109 = vst [vmem:[#allocation2 + $0x1a8] sm:$0xff] %v1045_v23  ;;  %v1471_v32 = vpop.eup %1470  ;;  %v1014_v29 = vmul.f32 %v950_v7, %v407_v47  ;;  %v1046_v33 = vmul.f32 %v982_v25, %v503_v4  ;;  %v409_v40 = vpop.f32.mrb[23].mxu0 }
 0x145   :  { %v505_v34 = vpop.f32.mrb[23].mxu1  ;;  %v1473_v36 = vpop.eup %1472  ;;  %v1015_v11 = vmul.f32 %v951_v16, %v409_v40  ;;  %v985_v42 = vmul.f32 20.0, %v1471_v32 }
 0x146   :  { %v1047_v6 = vmul.f32 %v983_v31, %v505_v34  ;;  %v1475_v24 = vpop.eup %1474  ;;  %1078 = vst [vmem:[#allocation2 + $0xb0] sm:$0xff] %v1014_v29  ;;  %1110 = vst [vmem:[#allocation2 + $0x1b0] sm:$0xff] %v1046_v33  ;;  %v955_v56 = vmul.f32 20.0, %v1473_v36 }
 0x147   :  { %1079 = vst [vmem:[#allocation2 + $0xb8] sm:$0xff] %v1015_v11  ;;  %v413_v37 = vpop.f32.mrb[24].mxu0  ;;  %v509_v18 = vpop.f32.mrb[24].mxu1  ;;  %v986_v55 = vmul.f32 20.0, %v1475_v24 }
 0x148   :  { %1111 = vst [vmem:[#allocation2 + $0x1b8] sm:$0xff] %v1047_v6  ;;  %v1477_v5 = vpop.eup %1476  ;;  %v1016_v45 = vmul.f32 %v952_v41, %v413_v37  ;;  %v1048_v48 = vmul.f32 %v984_v20, %v509_v18  ;;  %v415_v1 = vpop.f32.mrb[25].mxu0 }
 0x149   :  { %v511_v63 = vpop.f32.mrb[25].mxu1  ;;  %v1479_v43 = vpop.eup %1478  ;;  %v1017_v12 = vmul.f32 %v953_v13, %v415_v1  ;;  %v987_v53 = vmul.f32 20.0, %v1477_v5 }
 0x14a   :  { %v1049_v46 = vmul.f32 %v985_v42, %v511_v63  ;;  %v1481_v51 = vpop.eup %1480  ;;  %1080 = vst [vmem:[#allocation2 + $0xc0] sm:$0xff] %v1016_v45  ;;  %1112 = vst [vmem:[#allocation2 + $0x1c0] sm:$0xff] %v1048_v48  ;;  %v956_v30 = vmul.f32 20.0, %v1479_v43 }
 0x14b   :  { %v1483_v57 = vpop.eup %1482  ;;  %1081 = vst [vmem:[#allocation2 + $0xc8] sm:$0xff] %v1017_v12  ;;  %v419_v60 = vpop.f32.mrb[26].mxu0  ;;  %v957_v15 = vmul.f32 20.0, %v1481_v51 }
 0x14c   :  { %1113 = vst [vmem:[#allocation2 + $0x1c8] sm:$0xff] %v1049_v46  ;;  %v515_v61 = vpop.f32.mrb[26].mxu1  ;;  %v1485_v52 = vpop.eup %1484  ;;  %v1018_v49 = vmul.f32 %v954_v54, %v419_v60  ;;  %v988_v58 = vmul.f32 20.0, %v1483_v57 }
 0x14d   :  { %v1050_v28 = vmul.f32 %v986_v55, %v515_v61  ;;  %v421_v0 = vpop.f32.mrb[27].mxu0  ;;  %v517_v8 = vpop.f32.mrb[27].mxu1  ;;  %v989_v62 = vmul.f32 20.0, %v1485_v52 }
 0x14e   :  { %v1487_v35 = vpop.eup %1486  ;;  %v1019_v9 = vmul.f32 %v955_v56, %v421_v0  ;;  %v1051_v39 = vmul.f32 %v987_v53, %v517_v8  ;;  %1082 = vst [vmem:[#allocation2 + $0xd0] sm:$0xff] %v1018_v49 }
 0x14f   :  { %v1489_v38 = vpop.eup %1488  ;;  %1114 = vst [vmem:[#allocation2 + $0x1d0] sm:$0xff] %v1050_v28  ;;  %v425_v10 = vpop.f32.mrb[28].mxu0  ;;  %v958_v27 = vmul.f32 20.0, %v1487_v35 }
 0x150   :  { %v1491_v26 = vpop.eup %1490  ;;  %1083 = vst [vmem:[#allocation2 + $0xd8] sm:$0xff] %v1019_v9  ;;  %1115 = vst [vmem:[#allocation2 + $0x1d8] sm:$0xff] %v1051_v39  ;;  %v521_v2 = vpop.f32.mrb[28].mxu1  ;;  %v1020_v3 = vmul.f32 %v956_v30, %v425_v10  ;;  %v959_v25 = vmul.f32 20.0, %v1489_v38 }
 0x151   :  { %v1493_v19 = vpop.eup %1492  ;;  %v1052_v21 = vmul.f32 %v988_v58, %v521_v2  ;;  %v427_v50 = vpop.f32.mrb[29].mxu0  ;;  %v990_v23 = vmul.f32 20.0, %v1491_v26 }
 0x152   :  { %v523_v14 = vpop.f32.mrb[29].mxu1  ;;  %v1021_v22 = vmul.f32 %v957_v15, %v427_v50  ;;  %1084 = vst [vmem:[#allocation2 + $0xe0] sm:$0xff] %v1020_v3  ;;  %v991_v59 = vmul.f32 20.0, %v1493_v19 }
 0x153   :  { %v1053_v17 = vmul.f32 %v989_v62, %v523_v14  ;;  %1116 = vst [vmem:[#allocation2 + $0x1e0] sm:$0xff] %v1052_v21  ;;  %v431_v44 = vpop.f32.mrb[30].mxu0  ;;  %v527_v7 = vpop.f32.mrb[30].mxu1 }
 0x154   :  { %1085 = vst [vmem:[#allocation2 + $0xe8] sm:$0xff] %v1021_v22  ;;  %v1022_v47 = vmul.f32 %v958_v27, %v431_v44  ;;  %v1054_v4 = vmul.f32 %v990_v23, %v527_v7  ;;  %v433_v16 = vpop.f32.mrb[31].mxu0  ;;  %v529_v31 = vpop.f32.mrb[31].mxu1 }
 0x155   :  { %1117 = vst [vmem:[#allocation2 + $0x1e8] sm:$0xff] %v1053_v17  ;;  %v1023_v32 = vmul.f32 %v959_v25, %v433_v16  ;;  %v1055_v29 = vmul.f32 %v991_v59, %v529_v31 }
 0x156   :  { %1086 = vst [vmem:[#allocation2 + $0xf0] sm:$0xff] %v1022_v47  ;;  %1118 = vst [vmem:[#allocation2 + $0x1f0] sm:$0xff] %v1054_v4 }
 0x157   :  { %1087 = vst [vmem:[#allocation2 + $0xf8] sm:$0xff] %v1023_v32  ;;  %1119 = vst [vmem:[#allocation2 + $0x1f8] sm:$0xff] %v1055_v29 }
 0x158   :  { %1505 = shalt.err (!%p1502_p4)
}
 0x159   :  { %s1506_s25 = scalar_lea.hbm %s2221_s4, 8192 }
 0x15a   :  { %p1507_p5 = scmp.ne.s32.totalorder %s2221_s4, %s1506_s25  ;;  %p1510_p6 = scmp.lt.u32.totalorder %s1506_s25, %s2221_s4 }
 0x15c   :  { %p1512_p7 = pnand %p1510_p6, %p1507_p5 }
 0x15e   :  { %1515 = shalt.err (!%p1512_p7)
}
 0x15f   :  { %s1520_s29 = smov 256   ;;  %s1521_s30 = smov 16  }
 0x160   :  { %1131 = dma.vmem_to_hbm [thread:$0]  %s1126_s21, 8192, %s2221_s4, [#allocation3], %s1520_s29, %s1520_s29, %s1521_s30  }
 0x161   :  { %1516 = dma.done.wait [#allocation3], 8192  }
 0x162   :  { %1517 = vsyncadd [#allocation3], 4294959104 }
 0x163   :  { %1135 = vsyncpa [#allocation3], 1 }

</bundles_post_ra>
